<compile_context>
chip_gen: v7x
topology: tpu7x:2x2x1
jax: 0.10.0
libtpu: 0.0.40
codegen_flags: <defaults>
</compile_context>

<pallas_src>
import functools

import jax
import jax.numpy as jnp
from jax.experimental import pallas as pl
from jax.experimental.pallas import tpu as pltpu

LN_EPS = 1e-5  # torch.nn.LayerNorm default


def _round_up(a, b):
    return (a + b - 1) // b * b


def ada_layernorm_kernel(x_ref, ts_ref, w_ref, b_ref, o_ref, *, matmul_dtype=None):
    # x_ref, ts_ref : (tm, C) row tiles
    # w_ref         : (C, 2C) fused Linear weight (pre-transposed)
    # b_ref         : (1, 2C) fused Linear bias, f32, "+1" folded into scale half
    ts = ts_ref[...]
    w = w_ref[...]
    if matmul_dtype is not None:           # e.g. bf16 dot operands on v5e
        ts = ts.astype(matmul_dtype)
        w = w.astype(matmul_dtype)

    # One fused MXU matmul -> (tm, 2C) f32 embedding. The half-slices are
    # lane-tile aligned (free) whenever C % 128 == 0.
    emb = jnp.dot(ts, w, preferred_element_type=jnp.float32) + b_ref[...]
    C = x_ref.shape[-1]
    scale1 = emb[:, :C]    # == 1 + scale  (the +1 lives in the fused bias)
    shift = emb[:, C:]

    # LayerNorm over last dim, no affine params. One-pass biased statistics in
    # f32, clamped so E[x^2] - E[x]^2 can never go (numerically) negative.
    x = x_ref[...].astype(jnp.float32)
    inv_c = 1.0 / C
    mean = jnp.sum(x, axis=-1, keepdims=True) * inv_c
    ex2 = jnp.sum(x * x, axis=-1, keepdims=True) * inv_c
    var = jnp.maximum(ex2 - mean * mean, 0.0)
    x_norm = (x - mean) * jax.lax.rsqrt(var + LN_EPS)

    o_ref[...] = (x_norm * scale1 + shift).astype(o_ref.dtype)


def prepare_params(weight, bias):
    """Fuse nn.Linear(n_embd, 2*n_embd) params for the kernel.

    weight: (2C, C) torch layout, bias: (2C,).
    Returns w_fused (C, 2C) in the weight's dtype and b_fused (1, 2C) in f32
    with the AdaLN "+1" folded into the scale half of the bias.
    """
    C = weight.shape[1]
    w_fused = weight.T                                  # (C, 2C): [:, :C]=scale, [:, C:]=shift
    b = bias.astype(jnp.float32)
    b_fused = jnp.concatenate([b[:C] + 1.0, b[C:]]).reshape(1, 2 * C)
    return w_fused, b_fused


def ada_layernorm(x, timestep, w_fused, b_fused, *, tile_rows=1024,
                  vmem_budget_bytes=12 * 1024 * 1024, vmem_limit_bytes=None,
                  matmul_dtype=None):
    """x, timestep: (B, T, C). Params as produced by prepare_params()."""
    # TODO(synk): if callers actually pass a per-sample (B, 1, C) timestep
    # broadcast over T, hoist the linear out of the per-row stream (per-batch
    # scale/shift) instead of materializing a (B, T, C) timestep tensor.
    B, T, C = x.shape
    M = B * T
    x2 = x.reshape(M, C)
    ts2 = timestep.reshape(M, C)

    # Row tile: as large as the VMEM budget allows (x, ts, out double-buffered
    # plus the resident fused weight/bias), a multiple of 8, no larger than M.
    bytes_per_row = C * (x2.dtype.itemsize + ts2.dtype.itemsize + x2.dtype.itemsize)
    w_bytes = 2 * (w_fused.size * w_fused.dtype.itemsize
                   + b_fused.size * b_fused.dtype.itemsize)
    avail = max(vmem_budget_bytes - w_bytes, 16 * bytes_per_row)
    tm_vmem = max(8, (avail // (2 * bytes_per_row)) // 8 * 8)

    m8 = _round_up(M, 8)
    tm = max(8, min(tile_rows, m8, tm_vmem))
    if tm >= m8 and m8 >= 16:
        # Keep at least two grid steps so the "parallel" axis can split across
        # both TensorCores on v7x (megacore elsewhere).
        tm = max(8, _round_up(m8 // 2, 8))
    grid = (pl.cdiv(M, tm),)

    kernel = functools.partial(ada_layernorm_kernel, matmul_dtype=matmul_dtype)

    out = pl.pallas_call(
        kernel,
        out_shape=jax.ShapeDtypeStruct((M, C), x.dtype),
        grid_spec=pltpu.PrefetchScalarGridSpec(
            num_scalar_prefetch=0,
            grid=grid,
            in_specs=[
                pl.BlockSpec((tm, C), lambda i: (i, 0)),       # x rows
                pl.BlockSpec((tm, C), lambda i: (i, 0)),       # timestep rows
                pl.BlockSpec((C, 2 * C), lambda i: (0, 0)),    # fused W (pre-T)
                pl.BlockSpec((1, 2 * C), lambda i: (0, 0)),    # fused bias (+1 folded)
            ],
            out_specs=pl.BlockSpec((tm, C), lambda i: (i, 0)),
        ),
        compiler_params=pltpu.CompilerParams(
            dimension_semantics=("parallel",),
            vmem_limit_bytes=vmem_limit_bytes,
        ),
    )(x2, ts2, w_fused, b_fused)

    return out.reshape(B, T, C)


def ada_layernorm_ref(x, timestep, weight, bias):
    """Pure-JAX reference mirroring the PyTorch forward (torch param layout)."""
    C = x.shape[-1]
    emb = jnp.einsum("btc,dc->btd", timestep, weight) + bias
    scale, shift = emb[..., :C], emb[..., C:]
    mean = jnp.mean(x, axis=-1, keepdims=True)
    var = jnp.mean((x - mean) ** 2, axis=-1, keepdims=True)
    xn = (x - mean) * jax.lax.rsqrt(var + LN_EPS)
    return xn * (1.0 + scale) + shift


if __name__ == "__main__":
    # C = 128 keeps output stores lane-dense; B*T = 144 rows exercises the
    # multi-step grid both with an even split and with a ragged last block.
    B, T, C = 2, 72, 128
    key = jax.random.PRNGKey(0)
    kx, kt, kw, kb = jax.random.split(key, 4)

    x = jax.random.normal(kx, (B, T, C), dtype=jnp.float32)
    timestep = jax.random.normal(kt, (B, T, C), dtype=jnp.float32)

    # nn.Linear(C, 2C): weight (2C, C), bias (2C,), kaiming-uniform-style bound.
    bound = 1.0 / jnp.sqrt(jnp.float32(C))
    weight = jax.random.uniform(kw, (2 * C, C), minval=-bound, maxval=bound,
                                dtype=jnp.float32)
    bias = jax.random.uniform(kb, (2 * C,), minval=-bound, maxval=bound,
                              dtype=jnp.float32)

    w_fused, b_fused = prepare_params(weight, bias)
    ref = ada_layernorm_ref(x, timestep, weight, bias)

    # f32, default tile: 144 rows -> tm=72, 2 grid steps (even split).
    out = jax.block_until_ready(ada_layernorm(x, timestep, w_fused, b_fused))
    assert out.shape == (B, T, C)
    assert jnp.allclose(out, ref, atol=2e-5, rtol=2e-5), "f32 mismatch (default tile)"

    # f32, small tile forcing a ragged last block (tm=64 -> 3 steps, last block
    # partially OOB) to exercise masked stores with no host-side pad/slice.
    out_r = jax.block_until_ready(
        ada_layernorm(x, timestep, w_fused, b_fused, tile_rows=64))
    assert jnp.allclose(out_r, ref, atol=2e-5, rtol=2e-5), "f32 mismatch (ragged tile)"

    # bf16 I/O (halves the three M x C HBM streams); stats + MXU accumulation
    # remain f32 inside the kernel.
    xb = x.astype(jnp.bfloat16)
    tb = timestep.astype(jnp.bfloat16)
    wb = w_fused.astype(jnp.bfloat16)
    weight_bf = weight.astype(jnp.bfloat16).astype(jnp.float32)
    ref_b = ada_layernorm_ref(xb.astype(jnp.float32), tb.astype(jnp.float32),
                              weight_bf, bias)
    out_b = jax.block_until_ready(ada_layernorm(xb, tb, wb, b_fused))
    assert out_b.dtype == jnp.bfloat16
    assert jnp.allclose(out_b.astype(jnp.float32), ref_b, atol=0.15, rtol=0.1), \
        "bf16 mismatch"

    print("KERNEL_OK")
</pallas_src>

<mosaic_0001>
module attributes {stable_mosaic.version = 11 : i64} {
  func.func @ada_layernorm_kernel(%arg0: i32, %arg1: memref<72x128xf32, #tpu.memory_space<vmem>>, %arg2: memref<72x128xf32, #tpu.memory_space<vmem>>, %arg3: memref<128x256xf32, #tpu.memory_space<vmem>>, %arg4: memref<1x256xf32, #tpu.memory_space<vmem>>, %arg5: memref<72x128xf32, #tpu.memory_space<vmem>>) attributes {dimension_semantics = [#tpu.dimension_semantics<parallel>], iteration_bounds = array<i64: 2>, scalar_prefetch = 0 : i64, scratch_operands = 0 : i64, tpu.core_type = #tpu.core_type<tc>, window_params = [{transform_indices = @transform_0, window_bounds = array<i64: 72, 128>}, {transform_indices = @transform_1, window_bounds = array<i64: 72, 128>}, {pipeline_mode = #tpu.pipeline_mode<synchronous>, transform_indices = @transform_2, window_bounds = array<i64: 128, 256>}, {pipeline_mode = #tpu.pipeline_mode<synchronous>, transform_indices = @transform_3, window_bounds = array<i64: 1, 256>}, {transform_indices = @transform_4, window_bounds = array<i64: 72, 128>}]} {
    %c0 = arith.constant 0 : index
    %c0_0 = arith.constant 0 : index
    %0 = vector.load %arg2[%c0, %c0_0] : memref<72x128xf32, #tpu.memory_space<vmem>>, vector<72x128xf32>
    %c0_1 = arith.constant 0 : index
    %c0_2 = arith.constant 0 : index
    %1 = vector.load %arg3[%c0_1, %c0_2] : memref<128x256xf32, #tpu.memory_space<vmem>>, vector<128x256xf32>
    %cst = arith.constant dense<0.000000e+00> : vector<72x256xf32>
    %2 = tpu.matmul %0, %1, %cst {dimension_numbers = #tpu.dot_dimension_numbers<[1], [0], [0], [1], [0, 0, 1, 1], [], []>} : vector<72x128xf32>, vector<128x256xf32>, vector<72x256xf32> -> vector<72x256xf32>
    %c0_3 = arith.constant 0 : index
    %c0_4 = arith.constant 0 : index
    %3 = vector.load %arg4[%c0_3, %c0_4] : memref<1x256xf32, #tpu.memory_space<vmem>>, vector<1x256xf32>
    %4 = vector.broadcast %3 : vector<1x256xf32> to vector<72x256xf32>
    %5 = arith.addf %2, %4 : vector<72x256xf32>
    %6 = vector.extract_strided_slice %5 {offsets = [0, 0], sizes = [72, 128], strides = [1, 1]} : vector<72x256xf32> to vector<72x128xf32>
    %7 = vector.extract_strided_slice %5 {offsets = [0, 128], sizes = [72, 128], strides = [1, 1]} : vector<72x256xf32> to vector<72x128xf32>
    %c0_5 = arith.constant 0 : index
    %c0_6 = arith.constant 0 : index
    %8 = vector.load %arg1[%c0_5, %c0_6] : memref<72x128xf32, #tpu.memory_space<vmem>>, vector<72x128xf32>
    %cst_7 = arith.constant dense<0.000000e+00> : vector<72xf32>
    %9 = vector.multi_reduction <add>, %8, %cst_7 [1] : vector<72x128xf32> to vector<72xf32>
    %10 = vector.shape_cast %9 : vector<72xf32> to vector<72x1xf32>
    %cst_8 = arith.constant 7.812500e-03 : f32
    %11 = vector.broadcast %cst_8 : f32 to vector<72x1xf32>
    %12 = arith.mulf %10, %11 : vector<72x1xf32>
    %13 = arith.mulf %8, %8 : vector<72x128xf32>
    %cst_9 = arith.constant dense<0.000000e+00> : vector<72xf32>
    %14 = vector.multi_reduction <add>, %13, %cst_9 [1] : vector<72x128xf32> to vector<72xf32>
    %15 = vector.shape_cast %14 : vector<72xf32> to vector<72x1xf32>
    %cst_10 = arith.constant 7.812500e-03 : f32
    %16 = vector.broadcast %cst_10 : f32 to vector<72x1xf32>
    %17 = arith.mulf %15, %16 : vector<72x1xf32>
    %18 = arith.mulf %12, %12 : vector<72x1xf32>
    %19 = arith.subf %17, %18 : vector<72x1xf32>
    %cst_11 = arith.constant 0.000000e+00 : f32
    %20 = vector.broadcast %cst_11 : f32 to vector<72x1xf32>
    %21 = arith.maximumf %19, %20 : vector<72x1xf32>
    %22 = vector.broadcast %12 : vector<72x1xf32> to vector<72x128xf32>
    %23 = arith.subf %8, %22 : vector<72x128xf32>
    %cst_12 = arith.constant 9.99999974E-6 : f32
    %24 = vector.broadcast %cst_12 : f32 to vector<72x1xf32>
    %25 = arith.addf %21, %24 : vector<72x1xf32>
    %26 = math.rsqrt %25 : vector<72x1xf32>
    %27 = vector.broadcast %26 : vector<72x1xf32> to vector<72x128xf32>
    %28 = arith.mulf %23, %27 : vector<72x128xf32>
    %29 = arith.mulf %28, %6 : vector<72x128xf32>
    %30 = arith.addf %29, %7 : vector<72x128xf32>
    %c0_13 = arith.constant 0 : index
    %c0_14 = arith.constant 0 : index
    %31 = vector.load %arg5[%c0_13, %c0_14] : memref<72x128xf32, #tpu.memory_space<vmem>>, vector<72x128xf32>
    tpu.vector_store %arg5[%c0_13, %c0_14], %30 {strides = array<i32>} : memref<72x128xf32, #tpu.memory_space<vmem>>, vector<72x128xf32>,
    return
  }
  func.func @transform_0(%arg0: i32) -> (i32, i32) {
    %c0_i32 = arith.constant 0 : i32
    %c0_i32_0 = arith.constant 0 : i32
    return %arg0, %c0_i32 : i32, i32
  }
  func.func @transform_1(%arg0: i32) -> (i32, i32) {
    %c0_i32 = arith.constant 0 : i32
    %c0_i32_0 = arith.constant 0 : i32
    return %arg0, %c0_i32 : i32, i32
  }
  func.func @transform_2(%arg0: i32) -> (i32, i32) {
    %c0_i32 = arith.constant 0 : i32
    %c0_i32_0 = arith.constant 0 : i32
    %c0_i32_1 = arith.constant 0 : i32
    return %c0_i32, %c0_i32_0 : i32, i32
  }
  func.func @transform_3(%arg0: i32) -> (i32, i32) {
    %c0_i32 = arith.constant 0 : i32
    %c0_i32_0 = arith.constant 0 : i32
    %c0_i32_1 = arith.constant 0 : i32
    return %c0_i32, %c0_i32_0 : i32, i32
  }
  func.func @transform_4(%arg0: i32) -> (i32, i32) {
    %c0_i32 = arith.constant 0 : i32
    %c0_i32_0 = arith.constant 0 : i32
    return %arg0, %c0_i32 : i32, i32
  }
}

</mosaic_0001>

<bundles_post_ra>
// kernel: tpu_custom_call.1
= control target key start
LH: loop header
LB: loop body
LE: loop exit
PB: predicated region body
PF: predicated region fallthrough
CT: control target
= control target key end

     0   :  { %s1504_s0 = inlined_call_operand.hbm [shape: f32[144,128], index: 0, kind: input, shape index: {}]   ;;  %s1505_s1 = inlined_call_operand.hbm [shape: f32[144,128], index: 1, kind: input, shape index: {}]   ;;  %s1506_s2 = inlined_call_operand.hbm [shape: f32[128,256], index: 2, kind: input, shape index: {}]   ;;  %s1507_s3 = inlined_call_operand.vmem [shape: f32[1,256], index: 3, kind: input, shape index: {}]   ;;  %s1508_s4 = inlined_call_operand.hbm [shape: f32[144,128], index: 4, kind: output, shape index: {}]  }
   0x1   :  { %1512 = sst [smem:[#allocation13_spill]] %s1504_s0 }
   0x2   :  { %9 = vsyncpa [#allocation3], 0 }
   0x3   :  { %11 = vsyncpa [#allocation3 + $0x1], 0 }
   0x4   :  { %12 = vsyncpa [#allocation6], 0 }
   0x5   :  { %14 = vsyncpa [#allocation6 + $0x1], 0 }
   0x6   :  { %15 = vsyncpa [#allocation4], 0 }
   0x7   :  { %17 = vsyncpa [#allocation4 + $0x1], 0  ;;  %s1078_s15 = smov 0   ;;  %s1080_s16 = smov 0  }
   0x8   :  { %s1082_s17 = smov 0   ;;  %s1084_s18 = smov 0  }
   0x9 LB: > { %s1099_s19 = sadd.s32 4294967295, %s1040_s18   ;;  %s726_s20 = sadd.s32 4294967294, %s1040_s18   ;;  %s1040_s18 = sphi %s1084_s18, %s1530_s18   ;;  %s1036_s17 = sphi %s1082_s17, %s1529_s17   ;;  %s1032_s16 = sphi %s1080_s16, %s1528_s16   ;;  %s1028_s15 = sphi %s1078_s15, %s1527_s15  }
   0xa   : > { %p43_p0 = scmp.ne.s32.totalorder %s1032_s16, %s1028_s15  ;;  %p1509_p1 = scmp.eq.s32.totalorder %s1099_s19, 0 }
   0xb   : > { %p141_p3 = scmp.eq.s32.totalorder %s726_s20, 1  ;;  %p727_p5 = scmp.ge.s32.totalorder %s1040_s18, 1 }
   0xc   : > { %p1108_p4 = por %p1509_p1, %p43_p0  ;;  %p148_p7 = scmp.lt.s32.totalorder %s1040_s18, 3 }
   0xd   : > { %p1113_p6 = por %p141_p3, %p43_p0  ;;  %s1042_s24 = smov [#allocation7]  }
   0xe   : > { %s1513_s21 = scalar_select %p1108_p4, 1, 0 }
   0xf   : > { %s1514_s22 = scalar_select %p1113_p6, 1, 0 }
  0x10   : > { %p1118_p8 = pnand %p727_p5, %p148_p7  ;;  %s160_s25 = sshll.u32 %s1042_s24, 4  ;;  %s1122_s25 = int_to_ptr.vmem [resolvable:$true] %s160_s25 }
  0x11   : > { %s1134_s27 = sadd.s32 1, %s1040_s18   ;;  %s30_s28 = sadd.s32 1, %s1036_s17 }
  0x12   : > { %s1515_s23 = scalar_select %p1118_p8, 1, 0 }
  0x13   : > { %p801_p9 = pneg %p1118_p8  ;;  %s27_s29 = ssub.s32 %s1040_s18, %s1134_s27 }
  0x14   : > { %s878_s6 = scalar_lea.hbm %s1506_s2, 4096 }
  0x15   : > { %p1129_p11 = pnand %p801_p9, %p1509_p1  ;;  %p879_p12 = scmp.ne.s32.totalorder %s1506_s2, %s878_s6 }
  0x16   : > { %p885_p5 = scmp.lt.u32.totalorder %s878_s6, %s1506_s2 }
  0x17   : > { %p880_p13 = pneg %p1129_p11 }
  0x19   : > { %p881_p0 = pnand %p880_p13, %p879_p12 }
  0x1b   : > { %p882_p3 = pneg %p881_p0 }
  0x1d   : > { %p887_p7 = pnand %p885_p5, %p882_p3 }
  0x1f   : > { %890 = shalt.err (!%p887_p7)
}
  0x20   : > { %s891_s11 = scalar_lea.vmem %s1122_s25, 4096  ;;  %p899_p2 = scmp.lt.s32.totalorder %s1122_s25, %s1122_s25 }
  0x21   : > { %p892_p9 = scmp.ne.s32.totalorder %s1122_s25, %s891_s11  ;;  %p900_p6 = scmp.lt.s32.totalorder %s891_s11, %s891_s11 }
  0x23   : > { %p894_p10 = pnand %p892_p9, %p880_p13  ;;  %p901_p4 = por %p900_p6, %p899_p2 }
  0x25   : > { %p895_p1 = pneg %p894_p10 }
  0x27   : > { %p902_p8 = pnand %p901_p4, %p895_p1 }
  0x29   : > { %905 = shalt.err (!%p902_p8)
}
  0x2a   : > { %s1043_s12 = smov 256   ;;  %s1044_s13 = smov 16  }
  0x2b   : > { %804 = dma.hbm_to_vmem [thread:$0]  (!%p1129_p11), %s1506_s2, 4096, %s1122_s25, [#allocation6], %s1043_s12, %s1043_s12, %s1044_s13  }
  0x2c   : > { %p28_p1 = scmp.eq.s32.totalorder %s27_s29, 0  ;;  %p37_p2 = scmp.ne.s32.totalorder %s1036_s17, %s1032_s16 }
  0x2d   : > { %p38_p4 = scmp.eq.s32.totalorder %s1040_s18, 0  ;;  %p817_p6 = scmp.lt.s32.totalorder %s1040_s18, 2 }
  0x2e   : > { %s1165_s24 = scalar_select %p28_p1, %s1036_s17, %s30_s28  }
  0x2f   : > { %p39_p8 = por %p38_p4, %p37_p2  ;;  %p1517_p10 = scmp.eq.s32.totalorder %s1099_s19, 1 }
  0x30   : > { %s177_s5 = sand.u32 1, %s1036_s17   ;;  %s737_s6 = smul.u32 1152, %s1040_s18 }
  0x31   : > { %p1169_p12 = por %p1517_p10, %p37_p2  ;;  %s1175_s7 = smul.u32 72, %s177_s5 }
  0x32   : > { %s1519_s0 = sld [smem:[#allocation13_spill]]  ;;  %p1184_p11 = pnand %p817_p6, %p39_p8 }
  0x33   : > { %s181_s29 = scalar_lea.vmem [#allocation2], %s1175_s7  ;;  %s1191_s10 = scalar_lea.sflag [#allocation3], %s177_s5 }
  0x34   : > { %s188_s9 = sshll.u32 %s181_s29, 4  ;;  %p908_p0 = pneg %p1184_p11  ;;  %s1189_s9 = int_to_ptr.vmem [resolvable:$true] %s188_s9 }
  0x38   : > { %s1182_s25 = scalar_lea.hbm %s1519_s0, %s737_s6  ;;  %s911_s14 = scalar_lea.hbm %s1519_s0, 2304 }
  0x39   : > { %s906_s11 = scalar_lea.hbm %s1182_s25, 1152  ;;  %p912_p7 = scmp.lt.u32.totalorder %s1182_s25, %s1519_s0 }
  0x3a   : > { %p907_p13 = scmp.ne.s32.totalorder %s1182_s25, %s906_s11  ;;  %p913_p9 = scmp.lt.u32.totalorder %s911_s14, %s906_s11 }
  0x3b   : > { %p915_p2 = scmp.lt.u32.totalorder %s906_s11, %s1182_s25 }
  0x3c   : > { %p909_p3 = pnand %p908_p0, %p907_p13  ;;  %p914_p1 = por %p913_p9, %p912_p7 }
  0x3e   : > { %p910_p5 = pneg %p909_p3  ;;  %p916_p4 = por %p915_p2, %p914_p1 }
  0x40   : > { %p917_p6 = pnand %p916_p4, %p910_p5 }
  0x42   : > { %920 = shalt.err (!%p917_p6)
}
  0x43   : > { %s921_s5 = scalar_lea.vmem %s1189_s9, 1152  ;;  %s1045_s8 = smov [#allocation2]  }
  0x44   : > { %p922_p8 = scmp.ne.s32.totalorder %s1189_s9, %s921_s5  ;;  %s926_s29 = sshll.u32 %s1045_s8, 4  ;;  %s927_s29 = int_to_ptr.vmem [resolvable:$false] %s926_s29 }
  0x45   : > { %s928_s12 = scalar_lea.vmem %s927_s29, 2304  ;;  %p929_p3 = scmp.lt.s32.totalorder %s1189_s9, %s927_s29 }
  0x46   : > { %p924_p10 = pnand %p922_p8, %p908_p0  ;;  %p930_p7 = scmp.lt.s32.totalorder %s928_s12, %s921_s5 }
  0x48   : > { %p925_p13 = pneg %p924_p10  ;;  %p931_p9 = por %p930_p7, %p929_p3 }
  0x4a   : > { %p932_p1 = pnand %p931_p9, %p925_p13 }
  0x4c   : > { %935 = shalt.err (!%p932_p1)
}
  0x4d   : > { %s1046_s11 = smov 128   ;;  %s1047_s13 = smov 8  }
  0x4e   : > { %808 = dma.hbm_to_vmem [thread:$0]  (!%p1184_p11), %s1182_s25, 1152, %s1189_s9, %s1191_s10, %s1046_s11, %s1046_s11, %s1047_s13  }
  0x4f   : > { %s198_s14 = sand.u32 1, %s1040_s18   ;;  %s1228_s5 = scalar_lea.hbm %s1505_s1, %s737_s6 }
  0x50   : > { %s202_s8 = scalar_lea.vmem [#allocation5], %s1175_s7  ;;  %s1233_s12 = scalar_lea.sflag [#allocation6], %s198_s14 }
  0x51   : > { %s209_s29 = sshll.u32 %s202_s8, 4  ;;  %s936_s0 = scalar_lea.hbm %s1228_s5, 1152  ;;  %s1231_s29 = int_to_ptr.vmem [resolvable:$true] %s209_s29 }
  0x52   : > { %p937_p5 = scmp.ne.s32.totalorder %s1228_s5, %s936_s0  ;;  %s941_s6 = scalar_lea.hbm %s1505_s1, 2304 }
  0x53   : > { %p942_p6 = scmp.lt.u32.totalorder %s1228_s5, %s1505_s1  ;;  %p943_p8 = scmp.lt.u32.totalorder %s941_s6, %s936_s0 }
  0x54   : > { %p939_p2 = pnand %p937_p5, %p908_p0  ;;  %p945_p13 = scmp.lt.u32.totalorder %s936_s0, %s1228_s5 }
  0x55   : > { %p944_p10 = por %p943_p8, %p942_p6 }
  0x56   : > { %p940_p4 = pneg %p939_p2 }
  0x57   : > { %p946_p3 = por %p945_p13, %p944_p10 }
  0x59   : > { %p947_p7 = pnand %p946_p3, %p940_p4 }
  0x5b   : > { %950 = shalt.err (!%p947_p7)
}
  0x5c   : > { %s951_s7 = scalar_lea.vmem %s1231_s29, 1152  ;;  %s1048_s14 = smov [#allocation5]  }
  0x5d   : > { %p952_p9 = scmp.ne.s32.totalorder %s1231_s29, %s951_s7  ;;  %s956_s26 = sshll.u32 %s1048_s14, 4  ;;  %s957_s26 = int_to_ptr.vmem [resolvable:$false] %s956_s26 }
  0x5e   : > { %s958_s8 = scalar_lea.vmem %s957_s26, 2304  ;;  %p959_p2 = scmp.lt.s32.totalorder %s1231_s29, %s957_s26 }
  0x5f   : > { %p954_p1 = pnand %p952_p9, %p908_p0  ;;  %p960_p6 = scmp.lt.s32.totalorder %s958_s8, %s951_s7 }
  0x61   : > { %p955_p5 = pneg %p954_p1  ;;  %p961_p8 = por %p960_p6, %p959_p2 }
  0x63   : > { %p962_p10 = pnand %p961_p8, %p955_p5 }
  0x65   : > { %965 = shalt.err (!%p962_p10)
}
  0x66   : > { %811 = dma.hbm_to_vmem [thread:$0]  (!%p1184_p11), %s1228_s5, 1152, %s1231_s29, %s1233_s12, %s1046_s11, %s1046_s11, %s1047_s13  }
  0x67   : > { %p1521_p0 = scmp.ne.s32.totalorder %s1515_s23, 0 }
  0x68   : > { %s1265_s0 = sand.u32 (!%p1521_p0), 1, %s1032_s16   ;;  %p1522_p4 = scmp.ne.s32.totalorder (!%p1521_p0), %s1513_s21, 0 }
  0x69   : > { %221 = sbr.rel (%p1521_p0) target bundleno = 403 (0x193), region = 36  ;;  %s224_s28 = scalar_lea.sflag (!%p1521_p0), [#allocation3], %s1265_s0 }
  0x6a   : > { %s1268_s25 = smul.u32 (!%p1521_p0), 72, %s1265_s0 }
  0x6c   : > { %s1272_s9 = scalar_lea.vmem (!%p1521_p0), [#allocation2], %s1268_s25 }
  0x70   : > { %1011 = dma.done.wait (%p1522_p4), %s224_s28, 1152  }
  0x71   : > { %1013 = vsyncadd (%p1522_p4), %s224_s28, 4294966144  ;;  %s232_s23 = sand.u32 1, %s1099_s19   ;;  %s1280_s13 = scalar_lea.vmem [#allocation5], %s1268_s25 }
  0x72   : > { %s233_s11 = scalar_lea.sflag [#allocation6], %s232_s23 }
  0x73   : > { %1015 = dma.done.wait (%p1522_p4), %s233_s11, 1152  }
  0x74   : > { %1017 = vsyncadd (%p1522_p4), %s233_s11, 4294966144  ;;  %p1523_p11 = scmp.eq.s32.totalorder %s1099_s19, 0 }
  0x76   : > { %1019 = dma.done.wait (%p1523_p11), [#allocation6], 4096   ;;  %p1524_p13 = pmov %p1523_p11 }
  0x77   : > { %v1049_v0 = vmov 0.0   ;;  %v283_v1 = vld [vmem:[#allocation7 + $0x8] sm:$0xff]  ;;  %v285_v2 = vld [vmem:[#allocation7 + $0x18] sm:$0xff]  ;;  %v282_v3 = vld [vmem:[#allocation7] sm:$0xff]  ;;  %s1426_s29 = scalar_lea.vmem [#allocation8], %s1268_s25  ;;  %s739_s12 = smul.u32 1152, %s1099_s19 }
  0x78   : > { %1021 = vsyncadd (%p1524_p13), [#allocation6], 4294963200  ;;  %390 = vmatprep.mubr.f32.mxu0 %v1049_v0  ;;  %420 = vmatprep.mubr.f32.mxu1 %v1049_v0  ;;  %v740_v4 = vpack.c.bf16 %v285_v2, %v283_v1  ;;  %v284_v5 = vld [vmem:[#allocation7 + $0x10] sm:$0xff]  ;;  %v287_v6 = vld [vmem:[#allocation7 + $0x28] sm:$0xff]  ;;  %s621_s6 = sshll.u32 %s1426_s29, 4  ;;  %s608_s19 = scalar_lea.sflag [#allocation4], %s1265_s0  ;;  %s1459_s6 = int_to_ptr.vmem [resolvable:$true] %s621_s6 }
  0x79   : > { %v289_v7 = vld [vmem:[#allocation7 + $0x38] sm:$0xff]  ;;  %v742_v8 = vpack.c.bf16 %v284_v5, %v282_v3  ;;  %v286_v10 = vld [vmem:[#allocation7 + $0x20] sm:$0xff]  ;;  %v288_v11 = vld [vmem:[#allocation7 + $0x30] sm:$0xff]  ;;  %s1457_s7 = scalar_lea.hbm %s1508_s4, %s739_s12  ;;  %s966_s14 = scalar_lea.vmem %s1459_s6, 1152 }
  0x7a   : > { %v744_v9 = vpack.c.bf16 %v289_v7, %v287_v6  ;;  %v291_v12 = vld [vmem:[#allocation7 + $0x48] sm:$0xff]  ;;  %741 = vmatprep.subr.bf16.mxu0 %v740_v4  ;;  %772 = vmatprep.subr.bf16.mxu1 %v740_v4  ;;  %v293_v13 = vld [vmem:[#allocation7 + $0x58] sm:$0xff]  ;;  %v746_v14 = vpack.c.bf16 %v288_v11, %v286_v10  ;;  %v290_v16 = vld [vmem:[#allocation7 + $0x40] sm:$0xff]  ;;  %p967_p3 = scmp.ne.s32.totalorder %s1459_s6, %s966_s14  ;;  %s1050_s26 = smov [#allocation8]  }
  0x7b   : > { %743 = vmatpush1.bf16.msra.mxu0 %v742_v8  ;;  %780 = vmatpush1.bf16.msra.mxu1 %v742_v8  ;;  %v748_v15 = vpack.c.bf16 %v293_v13, %v291_v12  ;;  %v292_v17 = vld [vmem:[#allocation7 + $0x50] sm:$0xff]  ;;  %v295_v18 = vld [vmem:[#allocation7 + $0x68] sm:$0xff]  ;;  %v297_v19 = vld [vmem:[#allocation7 + $0x78] sm:$0xff]  ;;  %s970_s8 = sshll.u32 %s1050_s26, 4  ;;  %s971_s8 = int_to_ptr.vmem [resolvable:$false] %s970_s8 }
  0x7c   : > { %745 = vmatprep.subr.bf16.mxu0 %v744_v9  ;;  %773 = vmatprep.subr.bf16.mxu1 %v744_v9  ;;  %v750_v20 = vpack.c.bf16 %v292_v17, %v290_v16  ;;  %v752_v21 = vpack.c.bf16 %v297_v19, %v295_v18  ;;  %v294_v22 = vld [vmem:[#allocation7 + $0x60] sm:$0xff]  ;;  %v296_v23 = vld [vmem:[#allocation7 + $0x70] sm:$0xff]  ;;  %v299_v24 = vld [vmem:[#allocation7 + $0x88] sm:$0xff]  ;;  %p968_p7 = pnand %p967_p3, %p1169_p12  ;;  %s972_s25 = scalar_lea.vmem %s971_s8, 2304 }
  0x7d   : > { %v301_v25 = vld [vmem:[#allocation7 + $0x98] sm:$0xff]  ;;  %v1297_v27 = vld [vmem:[%s1272_s9] sm:$0xff]  ;;  %v754_v28 = vpack.c.bf16 %v296_v23, %v294_v22  ;;  %v300_v32 = vld [vmem:[#allocation7 + $0x90] sm:$0xff]  ;;  %p973_p1 = scmp.lt.s32.totalorder %s1459_s6, %s971_s8  ;;  %p974_p5 = scmp.lt.s32.totalorder %s972_s25, %s966_s14 }
  0x7e   : > { %v1293_v26 = vld [vmem:[%s1272_s9 + $0x10] sm:$0xff]  ;;  %v1300_v29 = vld [vmem:[%s1272_s9 + $0x18] sm:$0xff]  ;;  %v756_v30 = vpack.c.bf16 %v301_v25, %v299_v24  ;;  %v303_v33 = vld [vmem:[#allocation7 + $0xa8] sm:$0xff]  ;;  %454 = vadd.xlane.f32.xlu0 %v1297_v27  ;;  %v481_v52 = vmul.f32 %v1297_v27, %v1297_v27  ;;  %p969_p9 = pneg %p968_p7 }
  0x7f   : > { %747 = vmatpush1.bf16.msra.mxu0 %v746_v14  ;;  %781 = vmatpush1.bf16.msra.mxu1 %v746_v14  ;;  %v298_v31 = vld [vmem:[#allocation7 + $0x80] sm:$0xff]  ;;  %v305_v34 = vld [vmem:[#allocation7 + $0xb8] sm:$0xff]  ;;  %v1305_v35 = vld [vmem:[%s1272_s9 + $0x8] sm:$0xff]  ;;  %v483_v58 = vmul.f32 %v1293_v26, %v1293_v26  ;;  %v484_v1 = vmul.f32 %v1300_v29, %v1300_v29  ;;  %p975_p2 = por %p974_p5, %p973_p1 }
  0x80   : > { %749 = vmatprep.subr.bf16.mxu0 %v748_v15  ;;  %774 = vmatprep.subr.bf16.mxu1 %v748_v15  ;;  %v758_v36 = vpack.c.bf16 %v300_v32, %v298_v31  ;;  %v1308_v37 = vld [vmem:[%s1272_s9 + $0x28] sm:$0xff]  ;;  %v760_v38 = vpack.c.bf16 %v305_v34, %v303_v33  ;;  %v302_v39 = vld [vmem:[#allocation7 + $0xa0] sm:$0xff]  ;;  %v309_v42 = vld [vmem:[#allocation7 + $0xd8] sm:$0xff]  ;;  %v482_v60 = vmul.f32 %v1305_v35, %v1305_v35 }
  0x81   : > { %458 = vadd.xlane.f32.xlu1 %v1293_v26  ;;  %v304_v40 = vld [vmem:[#allocation7 + $0xb0] sm:$0xff]  ;;  %v307_v41 = vld [vmem:[#allocation7 + $0xc8] sm:$0xff]  ;;  %v1316_v45 = vld [vmem:[%s1272_s9 + $0x38] sm:$0xff]  ;;  %v486_v5 = vmul.f32 %v1308_v37, %v1308_v37  ;;  %p976_p6 = pnand %p975_p2, %p969_p9 }
  0x82   : > { %456 = vadd.xlane.f32.xlu0 %v1305_v35  ;;  %v1313_v43 = vld [vmem:[%s1272_s9 + $0x20] sm:$0xff]  ;;  %v762_v44 = vpack.c.bf16 %v304_v40, %v302_v39  ;;  %v764_v46 = vpack.c.bf16 %v309_v42, %v307_v41  ;;  %v308_v48 = vld [vmem:[#allocation7 + $0xd0] sm:$0xff]  ;;  %v313_v50 = vld [vmem:[#allocation7 + $0xf8] sm:$0xff]  ;;  %v488_v9 = vmul.f32 %v1316_v45, %v1316_v45 }
  0x83   : > { %751 = vmatpush1.bf16.msra.mxu0 %v750_v20  ;;  %782 = vmatpush1.bf16.msra.mxu1 %v750_v20  ;;  %v306_v47 = vld [vmem:[#allocation7 + $0xc0] sm:$0xff]  ;;  %v311_v49 = vld [vmem:[#allocation7 + $0xe8] sm:$0xff]  ;;  %v1321_v51 = vld [vmem:[%s1272_s9 + $0x30] sm:$0xff]  ;;  %v485_v63 = vmul.f32 %v1313_v43, %v1313_v43 }
  0x84   : > { %753 = vmatprep.subr.bf16.mxu0 %v752_v21  ;;  %775 = vmatprep.subr.bf16.mxu1 %v752_v21  ;;  %v766_v53 = vpack.c.bf16 %v308_v48, %v306_v47  ;;  %v768_v54 = vpack.c.bf16 %v313_v50, %v311_v49  ;;  %v310_v55 = vld [vmem:[#allocation7 + $0xe0] sm:$0xff]  ;;  %v312_v56 = vld [vmem:[#allocation7 + $0xf0] sm:$0xff]  ;;  %v487_v4 = vmul.f32 %v1321_v51, %v1321_v51 }
  0x85   : > { %460 = vadd.xlane.f32.xlu1 %v1300_v29  ;;  %v1327_v57 = vld [vmem:[%s1272_s9 + $0x40] sm:$0xff]  ;;  %v770_v59 = vpack.c.bf16 %v312_v56, %v310_v55  ;;  %v273_v61 = vld [vmem:[%s1280_s13] sm:$0xff]  ;;  %v278_v62 = vld [vmem:[%s1280_s13 + $0x28] sm:$0xff] }
  0x86   : > { %462 = vadd.xlane.f32.xlu0 %v1313_v43  ;;  %v274_v2 = vld [vmem:[%s1280_s13 + $0x8] sm:$0xff]  ;;  %v279_v3 = vld [vmem:[%s1280_s13 + $0x30] sm:$0xff]  ;;  %v280_v7 = vld [vmem:[%s1280_s13 + $0x38] sm:$0xff]  ;;  %v489_v8 = vmul.f32 %v1327_v57, %v1327_v57 }
  0x87   : > { %755 = vmatpush1.bf16.msra.mxu0 %v754_v28  ;;  %783 = vmatpush1.bf16.msra.mxu1 %v754_v28  ;;  %v275_v6 = vld [vmem:[%s1280_s13 + $0x10] sm:$0xff]  ;;  %v276_v10 = vld [vmem:[%s1280_s13 + $0x18] sm:$0xff]  ;;  %v281_v11 = vld [vmem:[%s1280_s13 + $0x40] sm:$0xff] }
  0x88   : > { %757 = vmatprep.subr.bf16.mxu0 %v756_v30  ;;  %776 = vmatprep.subr.bf16.mxu1 %v756_v30  ;;  %v277_v12 = vld [vmem:[%s1280_s13 + $0x20] sm:$0xff] }
  0x89   : > { %464 = vadd.xlane.f32.xlu1 %v1308_v37 }
  0x8a   : > { %466 = vadd.xlane.f32.xlu0 %v1321_v51 }
  0x8b   : > { %759 = vmatpush1.bf16.msra.mxu0 %v758_v36  ;;  %784 = vmatpush1.bf16.msra.mxu1 %v758_v36 }
  0x8c   : > { %761 = vmatprep.subr.bf16.mxu0 %v760_v38  ;;  %777 = vmatprep.subr.bf16.mxu1 %v760_v38 }
  0x8d   : > { %468 = vadd.xlane.f32.xlu1 %v1316_v45 }
  0x8e   : > { %470 = vadd.xlane.f32.xlu0 %v1327_v57 }
  0x8f   : > { %763 = vmatpush1.bf16.msra.mxu0 %v762_v44  ;;  %785 = vmatpush1.bf16.msra.mxu1 %v762_v44 }
  0x90   : > { %765 = vmatprep.subr.bf16.mxu0 %v764_v46  ;;  %778 = vmatprep.subr.bf16.mxu1 %v764_v46 }
  0x91   : > { %490 = vadd.xlane.f32.xlu1 %v481_v52 }
  0x92   : > { %492 = vadd.xlane.f32.xlu0 %v482_v60 }
  0x93   : > { %767 = vmatpush1.bf16.msra.mxu0 %v766_v53  ;;  %786 = vmatpush1.bf16.msra.mxu1 %v766_v53 }
  0x94   : > { %769 = vmatprep.subr.bf16.mxu0 %v768_v54  ;;  %779 = vmatprep.subr.bf16.mxu1 %v768_v54 }
  0x95   : > { %494 = vadd.xlane.f32.xlu1 %v483_v58 }
  0x96   : > { %496 = vadd.xlane.f32.xlu0 %v484_v1 }
  0x97   : > { %771 = vmatpush1.bf16.msra.mxu0 %v770_v59  ;;  %787 = vmatpush1.bf16.msra.mxu1 %v770_v59 }
  0x99   : > { %498 = vadd.xlane.f32.xlu1 %v485_v63 }
  0x9a   : > { %391 = vmatmul.mubr.f32.vlgmr.msra.gmra.mrb[0].mxu0 %v273_v61  ;;  %421 = vmatmul.mubr.f32.vlgmr.msra.gmra.mrb[0].mxu1 %v278_v62 }
  0x9b   : > { %396 = vmatprep.mubr.f32.mxu0 %v1049_v0  ;;  %426 = vmatprep.mubr.f32.mxu1 %v1049_v0 }
  0x9c   : > { %500 = vadd.xlane.f32.xlu0 %v486_v5 }
  0x9d   : > { %502 = vadd.xlane.f32.xlu1 %v487_v4 }
  0x9e   : > { %397 = vmatmul.mubr.f32.gmra.mrb[2].mxu0 %v274_v2  ;;  %427 = vmatmul.mubr.f32.gmra.mrb[2].mxu1 %v279_v3 }
  0x9f   : > { %402 = vmatprep.mubr.f32.mxu0 %v1049_v0  ;;  %432 = vmatprep.mubr.f32.mxu1 %v1049_v0 }
  0xa0   : > { %504 = vadd.xlane.f32.xlu0 %v488_v9 }
  0xa1   : > { %506 = vadd.xlane.f32.xlu1 %v489_v8 }
  0xa2   : > { %403 = vmatmul.mubr.f32.gmra.mrb[4].mxu0 %v275_v6  ;;  %433 = vmatmul.mubr.f32.gmra.mrb[4].mxu1 %v280_v7 }
  0xa3   : > { %408 = vmatprep.mubr.f32.mxu0 %v1049_v0  ;;  %438 = vmatprep.mubr.f32.mxu1 %v1049_v0 }
  0xa6   : > { %409 = vmatmul.mubr.f32.gmra.mrb[6].mxu0 %v276_v10  ;;  %439 = vmatmul.mubr.f32.gmra.mrb[6].mxu1 %v281_v11 }
  0xa7   : > { %414 = vmatprep.mubr.f32.mxu0 %v1049_v0 }
  0xaa   : > { %415 = vmatmul.mubr.f32.gmra.mrb[8].mxu0 %v277_v12 }
 0x10b   : > { %v455_v13 = vpop.xlane.xlu0 %454 }
 0x10c   : > { %v1362_v30 = vmul.f32 0.0078125, %v455_v13  ;;  %v316_v13 = vlaneseq }
 0x10e   : > { %v459_v14 = vpop.xlane.xlu1 %458  ;;  %v517_v33 = vmul.f32 %v1362_v30, %v1362_v30 }
 0x10f   : > { %v457_v15 = vpop.xlane.xlu0 %456  ;;  %v1374_v41 = vmul.f32 0.0078125, %v459_v14 }
 0x110   : > { %v1366_v32 = vmul.f32 0.0078125, %v457_v15 }
 0x111   : > { %v519_v54 = vmul.f32 %v1374_v41, %v1374_v41 }
 0x112   : > { %v461_v16 = vpop.xlane.xlu1 %460  ;;  %v518_v42 = vmul.f32 %v1366_v32, %v1366_v32 }
 0x113   : > { %v463_v17 = vpop.xlane.xlu0 %462  ;;  %v1382_v53 = vmul.f32 0.0078125, %v461_v16 }
 0x114   : > { %v1394_v11 = vmul.f32 0.0078125, %v463_v17 }
 0x115   : > { %v520_v2 = vmul.f32 %v1382_v53, %v1382_v53 }
 0x116   : > { %v465_v18 = vpop.xlane.xlu1 %464 }
 0x117   : > { %v467_v19 = vpop.xlane.xlu0 %466  ;;  %v1364_v31 = vmul.f32 0.0078125, %v465_v18 }
 0x118   : > { %v1370_v34 = vmul.f32 0.0078125, %v467_v19 }
 0x119   : > { %v522_v38 = vmul.f32 %v1364_v31, %v1364_v31 }
 0x11a   : > { %v469_v20 = vpop.xlane.xlu1 %468  ;;  %v523_v47 = vmul.f32 %v1370_v34, %v1370_v34 }
 0x11b   : > { %v471_v21 = vpop.xlane.xlu0 %470  ;;  %v1378_v46 = vmul.f32 0.0078125, %v469_v20 }
 0x11c   : > { %v1386_v55 = vmul.f32 0.0078125, %v471_v21  ;;  %v521_v21 = vmul.f32 %v1394_v11, %v1394_v11 }
 0x11d   : > { %v524_v59 = vmul.f32 %v1378_v46, %v1378_v46 }
 0x11e   : > { %v491_v22 = vpop.xlane.xlu1 %490  ;;  %v525_v3 = vmul.f32 %v1386_v55, %v1386_v55 }
 0x11f   : > { %v493_v23 = vpop.xlane.xlu0 %492  ;;  %v508_v36 = vmul.f32 0.0078125, %v491_v22 }
 0x120   : > { %v509_v44 = vmul.f32 0.0078125, %v493_v23  ;;  %v317_v23 = vshrl.u32 %v316_v13, 7 }
 0x121   : > { %v526_v48 = vsub.f32 %v508_v36, %v517_v33 }
 0x122   : > { %v495_v24 = vpop.xlane.xlu1 %494  ;;  %v527_v56 = vsub.f32 %v509_v44, %v518_v42  ;;  %v318_v36 = vsub.s32 0, %v317_v23 }
 0x123   : > { %v497_v25 = vpop.xlane.xlu0 %496  ;;  %v510_v58 = vmul.f32 0.0078125, %v495_v24  ;;  %v535_v60 = vmax.f32 %v526_v48, 0.0  ;;  %v549_v48 = vsub.f32 %v1308_v37, %v1364_v31 }
 0x124   : > { %v536_v4 = vmax.f32 %v527_v56, 0.0  ;;  %v511_v6 = vmul.f32 0.0078125, %v497_v25  ;;  %v545_v56 = vsub.f32 %v1305_v35, %v1366_v32  ;;  %v546_v35 = vsub.f32 %v1293_v26, %v1374_v41 }
 0x125   : > { %v528_v5 = vsub.f32 %v510_v58, %v519_v54  ;;  %v553_v7 = vadd.f32 1e-05, %v535_v60  ;;  %v550_v58 = vsub.f32 %v1321_v51, %v1370_v34 }
 0x126   : > { %v499_v28 = vpop.xlane.xlu1 %498  ;;  %v554_v14 = vadd.f32 1e-05, %v536_v4  ;;  %v529_v16 = vsub.f32 %v511_v6, %v520_v2  ;;  %v551_v4 = vsub.f32 %v1316_v45, %v1378_v46 }
 0x127   : > { %v537_v15 = vmax.f32 %v528_v5, 0.0  ;;  %860 = vrsqrt.f32 %v553_v7  ;;  %v512_v22 = vmul.f32 0.0078125, %v499_v28 }
 0x128   : > { %v538_v25 = vmax.f32 %v529_v16, 0.0 }
 0x129   : > { %v501_v0 = vpop.xlane.xlu0 %500  ;;  %v555_v24 = vadd.f32 1e-05, %v537_v15  ;;  %v530_v33 = vsub.f32 %v512_v22, %v521_v21 }
 0x12a   : > { %v513_v39 = vmul.f32 0.0078125, %v501_v0  ;;  %v503_v40 = vpop.xlane.xlu1 %502 }
 0x12b   : > { %v514_v49 = vmul.f32 0.0078125, %v503_v40  ;;  %v322_v40 = vsub.s32 1, %v317_v23  ;;  %v539_v44 = vmax.f32 %v530_v33, 0.0 }
 0x12c   : > { %v531_v50 = vsub.f32 %v513_v39, %v522_v38  ;;  %v556_v38 = vadd.f32 1e-05, %v538_v25  ;;  %v314_v39 = vld [vmem:[%s1507_s3] sm:$0x3] }
 0x12d   : > { %v505_v52 = vpop.xlane.xlu0 %504  ;;  %v532_v62 = vsub.f32 %v514_v49, %v523_v47  ;;  %v544_v47 = vsub.f32 %v1297_v27, %v1362_v30  ;;  %v1405_v49 = vrot.slane %v314_v39, %v318_v36 }
 0x12e   : > { %v515_v61 = vmul.f32 0.0078125, %v505_v52  ;;  %v540_v63 = vmax.f32 %v531_v50, 0.0  ;;  %v507_v1 = vpop.xlane.xlu1 %506  ;;  %v1407_v52 = vrot.slane %v314_v39, %v322_v40 }
 0x12f   : > { %v541_v9 = vmax.f32 %v532_v62, 0.0  ;;  %v516_v10 = vmul.f32 0.0078125, %v507_v1 }
 0x130   : > { %v533_v8 = vsub.f32 %v515_v61, %v524_v59  ;;  %v558_v12 = vadd.f32 1e-05, %v540_v63  ;;  %v557_v59 = vadd.f32 1e-05, %v539_v44 }
 0x131   : > { %v559_v19 = vadd.f32 1e-05, %v541_v9  ;;  %v534_v20 = vsub.f32 %v516_v10, %v525_v3  ;;  %v861_v28 = vpop.eup %860 }
 0x132   : > { %v542_v18 = vmax.f32 %v533_v8, 0.0  ;;  %862 = vrsqrt.f32 %v558_v12  ;;  %v571_v31 = vmul.f32 %v861_v28, %v544_v47 }
 0x133   : > { %864 = vrsqrt.f32 %v554_v14  ;;  %v543_v0 = vmax.f32 %v534_v20, 0.0  ;;  %v552_v20 = vsub.f32 %v1327_v57, %v1386_v55  ;;  %v548_v55 = vsub.f32 %v1313_v43, %v1394_v11 }
 0x134   : > { %v560_v17 = vadd.f32 1e-05, %v542_v18  ;;  %866 = vrsqrt.f32 %v559_v19  ;;  %v547_v19 = vsub.f32 %v1300_v29, %v1382_v53 }
 0x135   : > { %868 = vrsqrt.f32 %v555_v24  ;;  %v561_v42 = vadd.f32 1e-05, %v543_v0 }
 0x136   : > { %870 = vrsqrt.f32 %v560_v17 }
 0x137   : > { %872 = vrsqrt.f32 %v556_v38 }
 0x138   : > { %874 = vrsqrt.f32 %v561_v42 }
 0x139   : > { %876 = vrsqrt.f32 %v557_v59 }
 0x13c   : > { %v863_v50 = vpop.eup %862 }
 0x13d   : > { %v865_v54 = vpop.eup %864  ;;  %v576_v62 = vmul.f32 %v863_v50, %v549_v48 }
 0x13e   : > { %v867_v30 = vpop.eup %866  ;;  %v572_v6 = vmul.f32 %v865_v54, %v545_v56 }
 0x13f   : > { %v869_v34 = vpop.eup %868  ;;  %v577_v8 = vmul.f32 %v867_v30, %v550_v58 }
 0x140   : > { %v871_v9 = vpop.eup %870  ;;  %v573_v22 = vmul.f32 %v869_v34, %v546_v35 }
 0x141   : > { %v873_v18 = vpop.eup %872  ;;  %v578_v24 = vmul.f32 %v871_v9, %v551_v4 }
 0x142   : > { %v875_v25 = vpop.eup %874  ;;  %v574_v44 = vmul.f32 %v873_v18, %v547_v19 }
 0x143   : > { %v579_v47 = vmul.f32 %v875_v25, %v552_v20 }
 0x16d   : > { %v392_v60 = vpop.f32.mrb[0].mxu0  ;;  %v422_v27 = vpop.f32.mrb[0].mxu1 }
 0x16e   : > { %v393_v37 = vadd.f32 %v392_v60, %v1405_v49  ;;  %v423_v61 = vadd.f32 %v422_v27, %v1405_v49  ;;  %v394_v63 = vpop.f32.mrb[1].mxu0  ;;  %v424_v1 = vpop.f32.mrb[1].mxu1 }
 0x16f   : > { %v395_v2 = vadd.f32 %v394_v63, %v1407_v52  ;;  %v425_v3 = vadd.f32 %v424_v1, %v1407_v52  ;;  %v877_v60 = vpop.eup %876 }
 0x170   : > { %v580_v51 = vmul.f32 %v571_v31, %v393_v37  ;;  %v585_v32 = vmul.f32 %v576_v62, %v423_v61  ;;  %v575_v63 = vmul.f32 %v877_v60, %v548_v55 }
 0x171   : > { %v398_v5 = vpop.f32.mrb[2].mxu0  ;;  %v428_v7 = vpop.f32.mrb[2].mxu1 }
 0x172   : > { %v589_v10 = vadd.f32 %v580_v51, %v395_v2  ;;  %v594_v12 = vadd.f32 %v585_v32, %v425_v3  ;;  %v399_v13 = vadd.f32 %v398_v5, %v1405_v49  ;;  %v429_v14 = vadd.f32 %v428_v7, %v1405_v49  ;;  %v400_v26 = vpop.f32.mrb[3].mxu0  ;;  %v430_v41 = vpop.f32.mrb[3].mxu1 }
 0x173   : > { %v401_v15 = vadd.f32 %v400_v26, %v1407_v52  ;;  %v431_v16 = vadd.f32 %v430_v41, %v1407_v52 }
 0x174   : > { %598 = vst [vmem:[%s1426_s29] sm:$0xff] %v589_v10  ;;  %603 = vst [vmem:[%s1426_s29 + $0x28] sm:$0xff] %v594_v12  ;;  %v581_v45 = vmul.f32 %v572_v6, %v399_v13  ;;  %v586_v46 = vmul.f32 %v577_v8, %v429_v14 }
 0x175   : > { %v404_v21 = vpop.f32.mrb[4].mxu0  ;;  %v434_v23 = vpop.f32.mrb[4].mxu1 }
 0x176   : > { %v590_v17 = vadd.f32 %v581_v45, %v401_v15  ;;  %v595_v0 = vadd.f32 %v586_v46, %v431_v16  ;;  %v405_v33 = vadd.f32 %v404_v21, %v1405_v49  ;;  %v435_v36 = vadd.f32 %v434_v23, %v1405_v49  ;;  %v406_v38 = vpop.f32.mrb[5].mxu0  ;;  %v436_v39 = vpop.f32.mrb[5].mxu1 }
 0x177   : > { %v407_v40 = vadd.f32 %v406_v38, %v1407_v52  ;;  %v437_v29 = vadd.f32 %v436_v39, %v1407_v52 }
 0x178   : > { %599 = vst [vmem:[%s1426_s29 + $0x8] sm:$0xff] %v590_v17  ;;  %604 = vst [vmem:[%s1426_s29 + $0x30] sm:$0xff] %v595_v0  ;;  %v582_v57 = vmul.f32 %v573_v22, %v405_v33  ;;  %v587_v53 = vmul.f32 %v578_v24, %v435_v36 }
 0x179   : > { %v410_v42 = vpop.f32.mrb[6].mxu0  ;;  %v440_v28 = vpop.f32.mrb[6].mxu1 }
 0x17a   : > { %v591_v48 = vadd.f32 %v582_v57, %v407_v40  ;;  %v596_v50 = vadd.f32 %v587_v53, %v437_v29  ;;  %v411_v54 = vadd.f32 %v410_v42, %v1405_v49  ;;  %v441_v56 = vadd.f32 %v440_v28, %v1405_v49  ;;  %v412_v58 = vpop.f32.mrb[7].mxu0  ;;  %v442_v59 = vpop.f32.mrb[7].mxu1 }
 0x17b   : > { %v413_v27 = vadd.f32 %v412_v58, %v1407_v52  ;;  %v443_v43 = vadd.f32 %v442_v59, %v1407_v52 }
 0x17c   : > { %600 = vst [vmem:[%s1426_s29 + $0x10] sm:$0xff] %v591_v48  ;;  %605 = vst [vmem:[%s1426_s29 + $0x38] sm:$0xff] %v596_v50  ;;  %v583_v11 = vmul.f32 %v574_v44, %v411_v54  ;;  %v588_v30 = vmul.f32 %v579_v47, %v441_v56 }
 0x17d   : > { %v416_v37 = vpop.f32.mrb[8].mxu0 }
 0x17e   : > { %v592_v31 = vadd.f32 %v583_v11, %v413_v27  ;;  %v597_v61 = vadd.f32 %v588_v30, %v443_v43  ;;  %v417_v62 = vadd.f32 %v416_v37, %v1405_v49  ;;  %v418_v1 = vpop.f32.mrb[9].mxu0 }
 0x17f   : > { %v419_v2 = vadd.f32 %v418_v1, %v1407_v52 }
 0x180   : > { %601 = vst [vmem:[%s1426_s29 + $0x18] sm:$0xff] %v592_v31  ;;  %606 = vst [vmem:[%s1426_s29 + $0x40] sm:$0xff] %v597_v61  ;;  %v584_v3 = vmul.f32 %v575_v63, %v417_v62 }
 0x182   : > { %v593_v35 = vadd.f32 %v584_v3, %v419_v2 }
 0x184   : > { %602 = vst [vmem:[%s1426_s29 + $0x20] sm:$0xff] %v593_v35 }
 0x185   : > { %979 = shalt.err (!%p976_p6)
}
 0x186   : > { %s980_s28 = scalar_lea.hbm %s1457_s7, 1152  ;;  %s984_s11 = scalar_lea.hbm %s1508_s4, 2304 }
 0x187   : > { %p981_p8 = scmp.ne.s32.totalorder %s1457_s7, %s980_s28  ;;  %p985_p4 = scmp.lt.u32.totalorder %s1457_s7, %s1508_s4 }
 0x188   : > { %p986_p11 = scmp.lt.u32.totalorder %s984_s11, %s980_s28  ;;  %p988_p3 = scmp.lt.u32.totalorder %s980_s28, %s1457_s7 }
 0x189   : > { %p982_p10 = pnand %p981_p8, %p1169_p12 }
 0x18a   : > { %p987_p13 = por %p986_p11, %p985_p4 }
 0x18b   : > { %p983_p0 = pneg %p982_p10 }
 0x18c   : > { %p989_p7 = por %p988_p3, %p987_p13 }
 0x18e   : > { %p990_p9 = pnand %p989_p7, %p983_p0 }
 0x190   : > { %993 = shalt.err (!%p990_p9)
}
 0x191   : > { %s1051_s5 = smov 128   ;;  %s1052_s29 = smov 8  }
 0x192   : > { %799 = dma.vmem_to_hbm [thread:$0]  (%p1169_p12), %s1459_s6, 1152, %s1457_s7, %s608_s19, %s1051_s5, %s1051_s5, %s1052_s29  }
 0x193 PF: > { %s636_s12 = sand.u32 1, %s1028_s15   ;;  %p1525_p1 = scmp.ne.s32.totalorder %s1514_s22, 0 }
 0x194   : > { %p1526_p5 = scmp.ge.s32.totalorder %s1040_s18, 2  ;;  %s637_s10 = scalar_lea.sflag [#allocation4], %s636_s12 }
 0x196   : > { %p813_p2 = pnand %p1526_p5, %p1525_p1 }
 0x198   : > { %1023 = dma.done.wait (!%p813_p2), %s637_s10, 1152  }
 0x199   : > { %1025 = vsyncadd (!%p813_p2), %s637_s10, 4294966144  ;;  %p20_p6 = scmp.ge.s32.totalorder %s1134_s27, 4   ;;  %s1527_s15 = smov %s1032_s16 }
 0x19a   : > { %s1528_s16 = smov %s1036_s17  ;;  %s1529_s17 = smov %s1165_s24 }
 0x19b   : > { %s1530_s18 = smov %s1134_s27  ;;  %22 = sbr.rel (!%p20_p6) target bundleno = 9 (0x9), region = 98 }
 0x1a2   :  { %642 = vsyncpa [#allocation3], 1 }
 0x1a3   :  { %644 = vsyncpa [#allocation3 + $0x1], 1 }
 0x1a4   :  { %645 = vsyncpa [#allocation6], 1 }
 0x1a5   :  { %647 = vsyncpa [#allocation6 + $0x1], 1 }
 0x1a6   :  { %648 = vsyncpa [#allocation4], 1 }
 0x1a7   :  { %650 = vsyncpa [#allocation4 + $0x1], 1 }

</bundles_post_ra>
